<compile_context>
chip_gen: v5e
topology: v5e:2x2
jax: 0.10.0
libtpu: 0.0.40
codegen_flags: <defaults>
</compile_context>

<pallas_src>
import numpy as np
import jax
import jax.numpy as jnp
from jax import lax
from jax.experimental import pallas as pl
from jax.experimental.pallas import tpu as pltpu

SCALING_MIN = 1e-3  # cpflow ActNorm _scaling_min


# --------------------------------------------------------------------------------------
# Kernel-side helpers
# --------------------------------------------------------------------------------------
def _softplus(v):
    # numerically stable softplus (log1p form, matches F.softplus to ~1 ulp)
    return jnp.maximum(v, 0.0) + jnp.log1p(jnp.exp(-jnp.abs(v)))


def _vpu_matmul(w, x):
    """(Cout, K) @ (K, Bt) with the batch on lanes, as K rank-1 broadcast
    multiply-adds on the VPU.  Keeps everything in f32 (no MXU bf16 truncation)
    and avoids MXU weight-load / result-FIFO latency for these tiny K (2..16)."""
    K = w.shape[1]
    acc = w[:, 0:1] * x[0:1, :]
    for k in range(1, K):
        acc = acc + w[:, k:k + 1] * x[k:k + 1, :]
    return acc


def _slab_layout(dim, dimh):
    """Row offsets of the single packed parameter slab.  Every operand starts at
    an 8-aligned sublane row and at lane 0, so all in-kernel slices are cheap."""
    d2 = dimh // 2
    a8 = lambda n: -(-n // 8) * 8
    r_w0 = 0
    r_wz1 = r_w0 + a8(dimh)
    r_wx1 = r_wz1 + a8(d2)
    r_wx2 = r_wx1 + a8(d2)
    r_wxl = r_wx2 + a8(d2)
    r_b0 = r_wxl + 8
    r_b1 = r_b0 + a8(dimh)
    r_bx2 = r_b1 + a8(d2)
    r_wzl = r_bx2 + a8(d2)
    r_bout = r_wzl + a8(dimh)
    rows = r_bout + 8
    cols = max(dimh, dim)
    return dict(r_w0=r_w0, r_wz1=r_wz1, r_wx1=r_wx1, r_wx2=r_wx2, r_wxl=r_wxl,
                r_b0=r_b0, r_b1=r_b1, r_bx2=r_bx2, r_wzl=r_wzl, r_bout=r_bout,
                rows=rows, cols=cols)


def _make_icnn3_kernel(dim, dimh, block_b, chunk):
    d2 = dimh // 2
    L = _slab_layout(dim, dimh)
    n_chunks = block_b // chunk

    def kernel(x_ref, w_ref, out_ref):
        # Carve the packed slab (one small DMA per step) into its operands.
        # All slices are static, 8-aligned-row / lane-0 windows.
        w0 = w_ref[L["r_w0"]:L["r_w0"] + dimh, 0:dim]        # (dimh, dim)
        wz1 = w_ref[L["r_wz1"]:L["r_wz1"] + d2, 0:dimh]      # (d2, dimh) softplus'd * 1/dimh * an_s
        wx1 = w_ref[L["r_wx1"]:L["r_wx1"] + d2, 0:dim]       # (d2, dim)  * an_s
        wx2 = w_ref[L["r_wx2"]:L["r_wx2"] + d2, 0:dim]       # (d2, dim)
        wxl = w_ref[L["r_wxl"]:L["r_wxl"] + 1, 0:dim]        # (1, dim)   * anl_s
        b0 = w_ref[L["r_b0"]:L["r_b0"] + dimh, 0:1]          # (dimh, 1)
        b1 = w_ref[L["r_b1"]:L["r_b1"] + d2, 0:1]            # (d2, 1)   fused hidden bias (ActNorm folded)
        bx2 = w_ref[L["r_bx2"]:L["r_bx2"] + d2, 0:1]         # (d2, 1)
        wzl = w_ref[L["r_wzl"]:L["r_wzl"] + dimh, 0:1]       # (dimh, 1) softplus'd * 1/dimh * anl_s
        bout = w_ref[L["r_bout"]:L["r_bout"] + 1, 0:1]       # (1, 1)    anl_b * anl_s
        wzl_1 = wzl[0:d2]                                    # coeffs for z1
        wzl_2 = wzl[d2:dimh]                                 # coeffs for z2 (aug)

        def net(xc):                                         # xc: (dim, c), batch on lanes
            z = _softplus(_vpu_matmul(w0, xc) + b0)                              # (dimh, c)
            z1 = _softplus(_vpu_matmul(wz1, z) + _vpu_matmul(wx1, xc) + b1)      # (d2, c)
            z2 = _softplus(_vpu_matmul(wx2, xc) + bx2)                           # (d2, c)
            # Output layer without materializing cat([z1, z2]): two sublane reduces.
            return (jnp.sum(wzl_1 * z1, axis=0, keepdims=True)
                    + jnp.sum(wzl_2 * z2, axis=0, keepdims=True)
                    + _vpu_matmul(wxl, xc) + bout)                               # (1, c)

        # Static (unrolled) loop over 128-aligned lane chunks keeps the per-chunk
        # working set small even for large DMA blocks (no vreg spills).
        for c in range(n_chunks):
            c0 = c * chunk
            out_ref[:, c0:c0 + chunk] = net(x_ref[:, c0:c0 + chunk])

    return kernel


# --------------------------------------------------------------------------------------
# Host-side wrappers
# --------------------------------------------------------------------------------------
def prepare_icnn3_params(params):
    """One-time parameter preprocessing, hoisted out of the hot forward path:
      * PosLinear: fold softplus(weight) and the 1/in_features gain into W and b.
      * ActNormNoLogdet (x + b) * (exp(logs) + eps): fold the scale into the
        preceding weights and merge the bias terms, so the kernel only sees plain
        affine layers.
      * Pack everything into ONE 8-row-aligned f32 slab (one weight DMA/step)."""
    sp = jax.nn.softplus
    f32 = lambda v: jnp.asarray(v, jnp.float32)

    w0 = f32(params["w0"])                                   # (dimh, dim)
    dimh, dim = int(w0.shape[0]), int(w0.shape[1])
    d2 = dimh // 2
    L = _slab_layout(dim, dimh)

    an_s = jnp.exp(f32(params["an_logs"])) + SCALING_MIN     # (d2,)  hidden ActNorm scale
    anl_s = jnp.exp(f32(params["anl_logs"])) + SCALING_MIN   # (1,)   output ActNorm scale

    # PosLinear gain is 1/in_features = 1/dimh for both PosLinear layers.
    wz1_s = an_s[:, None] * (sp(f32(params["wz1"])) / dimh)  # (d2, dimh)
    wx1_s = an_s[:, None] * f32(params["wx1"])               # (d2, dim)
    b1 = an_s * (f32(params["bz1"]) / dimh + f32(params["bx1"]) + f32(params["an_b"]))  # (d2,)
    wzl_s = (anl_s * (sp(f32(params["wzl"])) / dimh)).reshape(dimh)                     # (dimh,)
    wxl_s = anl_s * f32(params["wxl"])                       # (1, dim)
    bout = (anl_s * f32(params["anl_b"])).reshape(())        # scalar

    slab = jnp.zeros((L["rows"], L["cols"]), jnp.float32)
    slab = slab.at[L["r_w0"]:L["r_w0"] + dimh, 0:dim].set(w0)
    slab = slab.at[L["r_wz1"]:L["r_wz1"] + d2, 0:dimh].set(wz1_s)
    slab = slab.at[L["r_wx1"]:L["r_wx1"] + d2, 0:dim].set(wx1_s)
    slab = slab.at[L["r_wx2"]:L["r_wx2"] + d2, 0:dim].set(f32(params["wx2"]))
    slab = slab.at[L["r_wxl"]:L["r_wxl"] + 1, 0:dim].set(wxl_s)
    slab = slab.at[L["r_b0"]:L["r_b0"] + dimh, 0].set(f32(params["b0"]))
    slab = slab.at[L["r_b1"]:L["r_b1"] + d2, 0].set(b1)
    slab = slab.at[L["r_bx2"]:L["r_bx2"] + d2, 0].set(f32(params["bx2"]))
    slab = slab.at[L["r_wzl"]:L["r_wzl"] + dimh, 0].set(wzl_s)
    slab = slab.at[L["r_bout"], 0].set(bout)
    return {"slab": slab, "dim": dim, "dimh": dimh}


def _choose_tiling(B, target_block_b):
    """Pick a lane-aligned batch tile and an in-kernel chunk size.
    Big tiles amortize the ~0.35us/grid-step overhead; the tile is capped at
    round_up(B/2, 128) so the grid keeps >= 2 steps when possible (v7x has two
    TensorCores sharding the 'parallel' axis)."""
    bb_target = max(128, (int(target_block_b) // 128) * 128)   # multiple of 128
    half = (((B + 1) // 2) + 127) // 128 * 128
    bb = max(128, min(bb_target, half))
    if bb <= 512:
        chunk = bb
    else:
        chunk = next(c for c in (512, 256, 128) if bb % c == 0)
    return bb, chunk


def icnn3_pallas(x, prep, *, block_b=1024, feature_major=False):
    """ICNN3 forward.  x: (B, dim) f32 (or (dim, B) if feature_major=True).
    prep: output of prepare_icnn3_params.  Returns (B, 1) f32 (same as torch)."""
    slab, dim, dimh = prep["slab"], prep["dim"], prep["dimh"]

    if feature_major:
        xT = jnp.asarray(x, jnp.float32)          # already (dim, B): no copy at all
    else:
        # One transpose copy to the lane-dense (dim, B) layout; no batch padding.
        # Supply feature_major=True upstream to remove this HBM round trip.
        xT = jnp.asarray(x, jnp.float32).T
    B = xT.shape[1]

    bb, chunk = _choose_tiling(B, block_b)
    # Partial last block: OOB lanes read garbage that flows through softplus/exp
    # (finite/inf, strictly lane-isolated) and is dropped on writeback -- this is
    # intentional; do not "fix" it with a NaN check.
    nb = pl.cdiv(B, bb)

    out = pl.pallas_call(
        _make_icnn3_kernel(dim, dimh, bb, chunk),
        out_shape=jax.ShapeDtypeStruct((1, B), jnp.float32),
        grid=(nb,),
        in_specs=[pl.BlockSpec((dim, bb), lambda i: (0, i)),
                  pl.BlockSpec(slab.shape, lambda i: (0, 0))],
        out_specs=pl.BlockSpec((1, bb), lambda i: (0, i)),
        compiler_params=pltpu.CompilerParams(dimension_semantics=("parallel",)),
    )(xT, slab)

    return out.T                                  # (B, 1); trivial relayout (dim of size 1)


# --------------------------------------------------------------------------------------
# Pure-JAX reference (for checking) and deterministic parameter init
# --------------------------------------------------------------------------------------
def icnn3_reference(x, p):
    sp = jax.nn.softplus
    dimh = p["w0"].shape[0]

    def lin(v, w, b=None):
        y = jnp.dot(v, w.T, precision=lax.Precision.HIGHEST)
        return y if b is None else y + b

    def poslin(v, w, b=None):
        gain = 1.0 / v.shape[1]
        y = jnp.dot(v, sp(w).T, precision=lax.Precision.HIGHEST)
        if b is not None:
            y = y + b
        return y * gain

    def actnorm(v, b, logs):
        return (v + b) * (jnp.exp(logs) + SCALING_MIN)

    z = sp(lin(x, p["w0"], p["b0"]))
    h = poslin(z, p["wz1"], p["bz1"]) + lin(x, p["wx1"], p["bx1"])
    z1 = sp(actnorm(h, p["an_b"], p["an_logs"]))
    z2 = sp(lin(x, p["wx2"], p["bx2"]))
    zc = jnp.concatenate([z1, z2], axis=1)
    o = poslin(zc, p["wzl"]) + lin(x, p["wxl"])
    return actnorm(o, p["anl_b"], p["anl_logs"])


def init_params(key, dim=2, dimh=16):
    d2 = dimh // 2
    ks = jax.random.split(key, 14)

    def lin_w(k, fout, fin):
        bound = 1.0 / np.sqrt(fin)
        return jax.random.uniform(k, (fout, fin), jnp.float32, -bound, bound)

    def lin_b(k, fout, fin):
        bound = 1.0 / np.sqrt(fin)
        return jax.random.uniform(k, (fout,), jnp.float32, -bound, bound)

    p = {}
    p["w0"] = lin_w(ks[0], dimh, dim);   p["b0"] = lin_b(ks[1], dimh, dim)
    p["wz1"] = lin_w(ks[2], d2, dimh);   p["bz1"] = lin_b(ks[3], d2, dimh)    # PosLinear
    p["wx1"] = lin_w(ks[4], d2, dim);    p["bx1"] = lin_b(ks[5], d2, dim)
    p["wx2"] = lin_w(ks[6], d2, dim);    p["bx2"] = lin_b(ks[7], d2, dim)
    # TODO(synk): cpflow ActNorm data-dependent init on the first forward is not
    # replicated; b / logs are treated as already-initialized learnable parameters.
    p["an_b"] = 0.1 * jax.random.normal(ks[8], (d2,), jnp.float32)
    p["an_logs"] = 0.1 * jax.random.normal(ks[9], (d2,), jnp.float32)
    p["wzl"] = lin_w(ks[10], 1, dimh)                                          # PosLinear, no bias
    p["wxl"] = lin_w(ks[11], 1, dim)                                           # Linear, no bias
    p["anl_b"] = 0.1 * jax.random.normal(ks[12], (1,), jnp.float32)            # frozen in torch, still applied
    p["anl_logs"] = 0.1 * jax.random.normal(ks[13], (1,), jnp.float32)
    return p


if __name__ == "__main__":
    B, DIM, DIMH = 512, 2, 16          # module defaults: dim=2, dimh=16, 2 hidden layers

    key = jax.random.PRNGKey(0)
    kx, kp = jax.random.split(key)
    x = jax.random.normal(kx, (B, DIM), jnp.float32)
    params = init_params(kp, DIM, DIMH)

    prep = prepare_icnn3_params(params)            # one-time, per parameter set
    fwd = jax.jit(lambda v: icnn3_pallas(v, prep))

    out = jax.block_until_ready(fwd(x))
    assert out.shape == (B, 1), out.shape

    ref = icnn3_reference(x, params)
    np.testing.assert_allclose(np.asarray(out), np.asarray(ref), rtol=1e-3, atol=1e-5)

    print("KERNEL_OK")
</pallas_src>

<mosaic_0001>
module attributes {stable_mosaic.version = 11 : i64} {
  func.func @kernel(%arg0: i32, %arg1: memref<2x256xf32, #tpu.memory_space<vmem>>, %arg2: memref<104x16xf32, #tpu.memory_space<vmem>>, %arg3: memref<1x256xf32, #tpu.memory_space<vmem>>) attributes {dimension_semantics = [#tpu.dimension_semantics<parallel>], iteration_bounds = array<i64: 2>, scalar_prefetch = 0 : i64, scratch_operands = 0 : i64, tpu.core_type = #tpu.core_type<tc>, window_params = [{transform_indices = @transform_0, window_bounds = array<i64: 2, 256>}, {pipeline_mode = #tpu.pipeline_mode<synchronous>, transform_indices = @transform_1, window_bounds = array<i64: 104, 16>}, {transform_indices = @transform_2, window_bounds = array<i64: 1, 256>}]} {
    %c0 = arith.constant 0 : index
    %c0_0 = arith.constant 0 : index
    %0 = vector.load %arg2[%c0, %c0_0] : memref<104x16xf32, #tpu.memory_space<vmem>>, vector<16x2xf32>
    %c16 = arith.constant 16 : index
    %c0_1 = arith.constant 0 : index
    %1 = vector.load %arg2[%c16, %c0_1] : memref<104x16xf32, #tpu.memory_space<vmem>>, vector<8x16xf32>
    %c24 = arith.constant 24 : index
    %c0_2 = arith.constant 0 : index
    %2 = vector.load %arg2[%c24, %c0_2] : memref<104x16xf32, #tpu.memory_space<vmem>>, vector<8x2xf32>
    %c32 = arith.constant 32 : index
    %c0_3 = arith.constant 0 : index
    %3 = vector.load %arg2[%c32, %c0_3] : memref<104x16xf32, #tpu.memory_space<vmem>>, vector<8x2xf32>
    %c40 = arith.constant 40 : index
    %c0_4 = arith.constant 0 : index
    %4 = vector.load %arg2[%c40, %c0_4] : memref<104x16xf32, #tpu.memory_space<vmem>>, vector<1x2xf32>
    %c48 = arith.constant 48 : index
    %c0_5 = arith.constant 0 : index
    %5 = vector.load %arg2[%c48, %c0_5] : memref<104x16xf32, #tpu.memory_space<vmem>>, vector<16x1xf32>
    %c64 = arith.constant 64 : index
    %c0_6 = arith.constant 0 : index
    %6 = vector.load %arg2[%c64, %c0_6] : memref<104x16xf32, #tpu.memory_space<vmem>>, vector<8x1xf32>
    %c72 = arith.constant 72 : index
    %c0_7 = arith.constant 0 : index
    %7 = vector.load %arg2[%c72, %c0_7] : memref<104x16xf32, #tpu.memory_space<vmem>>, vector<8x1xf32>
    %c80 = arith.constant 80 : index
    %c0_8 = arith.constant 0 : index
    %8 = vector.load %arg2[%c80, %c0_8] : memref<104x16xf32, #tpu.memory_space<vmem>>, vector<16x1xf32>
    %c96 = arith.constant 96 : index
    %c0_9 = arith.constant 0 : index
    %9 = vector.load %arg2[%c96, %c0_9] : memref<104x16xf32, #tpu.memory_space<vmem>>, vector<1x1xf32>
    %10 = vector.extract_strided_slice %8 {offsets = [0, 0], sizes = [8, 1], strides = [1, 1]} : vector<16x1xf32> to vector<8x1xf32>
    %11 = vector.extract_strided_slice %8 {offsets = [8, 0], sizes = [8, 1], strides = [1, 1]} : vector<16x1xf32> to vector<8x1xf32>
    %c0_10 = arith.constant 0 : index
    %c0_11 = arith.constant 0 : index
    %12 = vector.load %arg1[%c0_10, %c0_11] : memref<2x256xf32, #tpu.memory_space<vmem>>, vector<2x256xf32>
    %13 = vector.extract_strided_slice %0 {offsets = [0, 0], sizes = [16, 1], strides = [1, 1]} : vector<16x2xf32> to vector<16x1xf32>
    %14 = vector.extract_strided_slice %12 {offsets = [0, 0], sizes = [1, 256], strides = [1, 1]} : vector<2x256xf32> to vector<1x256xf32>
    %15 = vector.broadcast %13 : vector<16x1xf32> to vector<16x256xf32>
    %16 = vector.broadcast %14 : vector<1x256xf32> to vector<16x256xf32>
    %17 = arith.mulf %15, %16 : vector<16x256xf32>
    %18 = vector.extract_strided_slice %0 {offsets = [0, 1], sizes = [16, 1], strides = [1, 1]} : vector<16x2xf32> to vector<16x1xf32>
    %19 = vector.extract_strided_slice %12 {offsets = [1, 0], sizes = [1, 256], strides = [1, 1]} : vector<2x256xf32> to vector<1x256xf32>
    %20 = vector.broadcast %18 : vector<16x1xf32> to vector<16x256xf32>
    %21 = vector.broadcast %19 : vector<1x256xf32> to vector<16x256xf32>
    %22 = arith.mulf %20, %21 : vector<16x256xf32>
    %23 = arith.addf %17, %22 : vector<16x256xf32>
    %24 = vector.broadcast %5 : vector<16x1xf32> to vector<16x256xf32>
    %25 = arith.addf %23, %24 : vector<16x256xf32>
    %cst = arith.constant 0.000000e+00 : f32
    %26 = vector.broadcast %cst : f32 to vector<16x256xf32>
    %27 = arith.maximumf %25, %26 : vector<16x256xf32>
    %28 = math.absf %25 : vector<16x256xf32>
    %cst_12 = arith.constant 0.000000e+00 : f32
    %29 = vector.broadcast %cst_12 : f32 to vector<16x256xf32>
    %30 = arith.subf %29, %28 : vector<16x256xf32>
    %31 = math.exp %30 : vector<16x256xf32>
    %32 = math.log1p %31 : vector<16x256xf32>
    %33 = arith.addf %27, %32 : vector<16x256xf32>
    %34 = vector.extract_strided_slice %1 {offsets = [0, 0], sizes = [8, 1], strides = [1, 1]} : vector<8x16xf32> to vector<8x1xf32>
    %35 = vector.extract_strided_slice %33 {offsets = [0, 0], sizes = [1, 256], strides = [1, 1]} : vector<16x256xf32> to vector<1x256xf32>
    %36 = vector.broadcast %34 : vector<8x1xf32> to vector<8x256xf32>
    %37 = vector.broadcast %35 : vector<1x256xf32> to vector<8x256xf32>
    %38 = arith.mulf %36, %37 : vector<8x256xf32>
    %39 = vector.extract_strided_slice %1 {offsets = [0, 1], sizes = [8, 1], strides = [1, 1]} : vector<8x16xf32> to vector<8x1xf32>
    %40 = vector.extract_strided_slice %33 {offsets = [1, 0], sizes = [1, 256], strides = [1, 1]} : vector<16x256xf32> to vector<1x256xf32>
    %41 = vector.broadcast %39 : vector<8x1xf32> to vector<8x256xf32>
    %42 = vector.broadcast %40 : vector<1x256xf32> to vector<8x256xf32>
    %43 = arith.mulf %41, %42 : vector<8x256xf32>
    %44 = arith.addf %38, %43 : vector<8x256xf32>
    %45 = vector.extract_strided_slice %1 {offsets = [0, 2], sizes = [8, 1], strides = [1, 1]} : vector<8x16xf32> to vector<8x1xf32>
    %46 = vector.extract_strided_slice %33 {offsets = [2, 0], sizes = [1, 256], strides = [1, 1]} : vector<16x256xf32> to vector<1x256xf32>
    %47 = vector.broadcast %45 : vector<8x1xf32> to vector<8x256xf32>
    %48 = vector.broadcast %46 : vector<1x256xf32> to vector<8x256xf32>
    %49 = arith.mulf %47, %48 : vector<8x256xf32>
    %50 = arith.addf %44, %49 : vector<8x256xf32>
    %51 = vector.extract_strided_slice %1 {offsets = [0, 3], sizes = [8, 1], strides = [1, 1]} : vector<8x16xf32> to vector<8x1xf32>
    %52 = vector.extract_strided_slice %33 {offsets = [3, 0], sizes = [1, 256], strides = [1, 1]} : vector<16x256xf32> to vector<1x256xf32>
    %53 = vector.broadcast %51 : vector<8x1xf32> to vector<8x256xf32>
    %54 = vector.broadcast %52 : vector<1x256xf32> to vector<8x256xf32>
    %55 = arith.mulf %53, %54 : vector<8x256xf32>
    %56 = arith.addf %50, %55 : vector<8x256xf32>
    %57 = vector.extract_strided_slice %1 {offsets = [0, 4], sizes = [8, 1], strides = [1, 1]} : vector<8x16xf32> to vector<8x1xf32>
    %58 = vector.extract_strided_slice %33 {offsets = [4, 0], sizes = [1, 256], strides = [1, 1]} : vector<16x256xf32> to vector<1x256xf32>
    %59 = vector.broadcast %57 : vector<8x1xf32> to vector<8x256xf32>
    %60 = vector.broadcast %58 : vector<1x256xf32> to vector<8x256xf32>
    %61 = arith.mulf %59, %60 : vector<8x256xf32>
    %62 = arith.addf %56, %61 : vector<8x256xf32>
    %63 = vector.extract_strided_slice %1 {offsets = [0, 5], sizes = [8, 1], strides = [1, 1]} : vector<8x16xf32> to vector<8x1xf32>
    %64 = vector.extract_strided_slice %33 {offsets = [5, 0], sizes = [1, 256], strides = [1, 1]} : vector<16x256xf32> to vector<1x256xf32>
    %65 = vector.broadcast %63 : vector<8x1xf32> to vector<8x256xf32>
    %66 = vector.broadcast %64 : vector<1x256xf32> to vector<8x256xf32>
    %67 = arith.mulf %65, %66 : vector<8x256xf32>
    %68 = arith.addf %62, %67 : vector<8x256xf32>
    %69 = vector.extract_strided_slice %1 {offsets = [0, 6], sizes = [8, 1], strides = [1, 1]} : vector<8x16xf32> to vector<8x1xf32>
    %70 = vector.extract_strided_slice %33 {offsets = [6, 0], sizes = [1, 256], strides = [1, 1]} : vector<16x256xf32> to vector<1x256xf32>
    %71 = vector.broadcast %69 : vector<8x1xf32> to vector<8x256xf32>
    %72 = vector.broadcast %70 : vector<1x256xf32> to vector<8x256xf32>
    %73 = arith.mulf %71, %72 : vector<8x256xf32>
    %74 = arith.addf %68, %73 : vector<8x256xf32>
    %75 = vector.extract_strided_slice %1 {offsets = [0, 7], sizes = [8, 1], strides = [1, 1]} : vector<8x16xf32> to vector<8x1xf32>
    %76 = vector.extract_strided_slice %33 {offsets = [7, 0], sizes = [1, 256], strides = [1, 1]} : vector<16x256xf32> to vector<1x256xf32>
    %77 = vector.broadcast %75 : vector<8x1xf32> to vector<8x256xf32>
    %78 = vector.broadcast %76 : vector<1x256xf32> to vector<8x256xf32>
    %79 = arith.mulf %77, %78 : vector<8x256xf32>
    %80 = arith.addf %74, %79 : vector<8x256xf32>
    %81 = vector.extract_strided_slice %1 {offsets = [0, 8], sizes = [8, 1], strides = [1, 1]} : vector<8x16xf32> to vector<8x1xf32>
    %82 = vector.extract_strided_slice %33 {offsets = [8, 0], sizes = [1, 256], strides = [1, 1]} : vector<16x256xf32> to vector<1x256xf32>
    %83 = vector.broadcast %81 : vector<8x1xf32> to vector<8x256xf32>
    %84 = vector.broadcast %82 : vector<1x256xf32> to vector<8x256xf32>
    %85 = arith.mulf %83, %84 : vector<8x256xf32>
    %86 = arith.addf %80, %85 : vector<8x256xf32>
    %87 = vector.extract_strided_slice %1 {offsets = [0, 9], sizes = [8, 1], strides = [1, 1]} : vector<8x16xf32> to vector<8x1xf32>
    %88 = vector.extract_strided_slice %33 {offsets = [9, 0], sizes = [1, 256], strides = [1, 1]} : vector<16x256xf32> to vector<1x256xf32>
    %89 = vector.broadcast %87 : vector<8x1xf32> to vector<8x256xf32>
    %90 = vector.broadcast %88 : vector<1x256xf32> to vector<8x256xf32>
    %91 = arith.mulf %89, %90 : vector<8x256xf32>
    %92 = arith.addf %86, %91 : vector<8x256xf32>
    %93 = vector.extract_strided_slice %1 {offsets = [0, 10], sizes = [8, 1], strides = [1, 1]} : vector<8x16xf32> to vector<8x1xf32>
    %94 = vector.extract_strided_slice %33 {offsets = [10, 0], sizes = [1, 256], strides = [1, 1]} : vector<16x256xf32> to vector<1x256xf32>
    %95 = vector.broadcast %93 : vector<8x1xf32> to vector<8x256xf32>
    %96 = vector.broadcast %94 : vector<1x256xf32> to vector<8x256xf32>
    %97 = arith.mulf %95, %96 : vector<8x256xf32>
    %98 = arith.addf %92, %97 : vector<8x256xf32>
    %99 = vector.extract_strided_slice %1 {offsets = [0, 11], sizes = [8, 1], strides = [1, 1]} : vector<8x16xf32> to vector<8x1xf32>
    %100 = vector.extract_strided_slice %33 {offsets = [11, 0], sizes = [1, 256], strides = [1, 1]} : vector<16x256xf32> to vector<1x256xf32>
    %101 = vector.broadcast %99 : vector<8x1xf32> to vector<8x256xf32>
    %102 = vector.broadcast %100 : vector<1x256xf32> to vector<8x256xf32>
    %103 = arith.mulf %101, %102 : vector<8x256xf32>
    %104 = arith.addf %98, %103 : vector<8x256xf32>
    %105 = vector.extract_strided_slice %1 {offsets = [0, 12], sizes = [8, 1], strides = [1, 1]} : vector<8x16xf32> to vector<8x1xf32>
    %106 = vector.extract_strided_slice %33 {offsets = [12, 0], sizes = [1, 256], strides = [1, 1]} : vector<16x256xf32> to vector<1x256xf32>
    %107 = vector.broadcast %105 : vector<8x1xf32> to vector<8x256xf32>
    %108 = vector.broadcast %106 : vector<1x256xf32> to vector<8x256xf32>
    %109 = arith.mulf %107, %108 : vector<8x256xf32>
    %110 = arith.addf %104, %109 : vector<8x256xf32>
    %111 = vector.extract_strided_slice %1 {offsets = [0, 13], sizes = [8, 1], strides = [1, 1]} : vector<8x16xf32> to vector<8x1xf32>
    %112 = vector.extract_strided_slice %33 {offsets = [13, 0], sizes = [1, 256], strides = [1, 1]} : vector<16x256xf32> to vector<1x256xf32>
    %113 = vector.broadcast %111 : vector<8x1xf32> to vector<8x256xf32>
    %114 = vector.broadcast %112 : vector<1x256xf32> to vector<8x256xf32>
    %115 = arith.mulf %113, %114 : vector<8x256xf32>
    %116 = arith.addf %110, %115 : vector<8x256xf32>
    %117 = vector.extract_strided_slice %1 {offsets = [0, 14], sizes = [8, 1], strides = [1, 1]} : vector<8x16xf32> to vector<8x1xf32>
    %118 = vector.extract_strided_slice %33 {offsets = [14, 0], sizes = [1, 256], strides = [1, 1]} : vector<16x256xf32> to vector<1x256xf32>
    %119 = vector.broadcast %117 : vector<8x1xf32> to vector<8x256xf32>
    %120 = vector.broadcast %118 : vector<1x256xf32> to vector<8x256xf32>
    %121 = arith.mulf %119, %120 : vector<8x256xf32>
    %122 = arith.addf %116, %121 : vector<8x256xf32>
    %123 = vector.extract_strided_slice %1 {offsets = [0, 15], sizes = [8, 1], strides = [1, 1]} : vector<8x16xf32> to vector<8x1xf32>
    %124 = vector.extract_strided_slice %33 {offsets = [15, 0], sizes = [1, 256], strides = [1, 1]} : vector<16x256xf32> to vector<1x256xf32>
    %125 = vector.broadcast %123 : vector<8x1xf32> to vector<8x256xf32>
    %126 = vector.broadcast %124 : vector<1x256xf32> to vector<8x256xf32>
    %127 = arith.mulf %125, %126 : vector<8x256xf32>
    %128 = arith.addf %122, %127 : vector<8x256xf32>
    %129 = vector.extract_strided_slice %2 {offsets = [0, 0], sizes = [8, 1], strides = [1, 1]} : vector<8x2xf32> to vector<8x1xf32>
    %130 = vector.extract_strided_slice %12 {offsets = [0, 0], sizes = [1, 256], strides = [1, 1]} : vector<2x256xf32> to vector<1x256xf32>
    %131 = vector.broadcast %129 : vector<8x1xf32> to vector<8x256xf32>
    %132 = vector.broadcast %130 : vector<1x256xf32> to vector<8x256xf32>
    %133 = arith.mulf %131, %132 : vector<8x256xf32>
    %134 = vector.extract_strided_slice %2 {offsets = [0, 1], sizes = [8, 1], strides = [1, 1]} : vector<8x2xf32> to vector<8x1xf32>
    %135 = vector.extract_strided_slice %12 {offsets = [1, 0], sizes = [1, 256], strides = [1, 1]} : vector<2x256xf32> to vector<1x256xf32>
    %136 = vector.broadcast %134 : vector<8x1xf32> to vector<8x256xf32>
    %137 = vector.broadcast %135 : vector<1x256xf32> to vector<8x256xf32>
    %138 = arith.mulf %136, %137 : vector<8x256xf32>
    %139 = arith.addf %133, %138 : vector<8x256xf32>
    %140 = arith.addf %128, %139 : vector<8x256xf32>
    %141 = vector.broadcast %6 : vector<8x1xf32> to vector<8x256xf32>
    %142 = arith.addf %140, %141 : vector<8x256xf32>
    %cst_13 = arith.constant 0.000000e+00 : f32
    %143 = vector.broadcast %cst_13 : f32 to vector<8x256xf32>
    %144 = arith.maximumf %142, %143 : vector<8x256xf32>
    %145 = math.absf %142 : vector<8x256xf32>
    %cst_14 = arith.constant 0.000000e+00 : f32
    %146 = vector.broadcast %cst_14 : f32 to vector<8x256xf32>
    %147 = arith.subf %146, %145 : vector<8x256xf32>
    %148 = math.exp %147 : vector<8x256xf32>
    %149 = math.log1p %148 : vector<8x256xf32>
    %150 = arith.addf %144, %149 : vector<8x256xf32>
    %151 = vector.extract_strided_slice %3 {offsets = [0, 0], sizes = [8, 1], strides = [1, 1]} : vector<8x2xf32> to vector<8x1xf32>
    %152 = vector.extract_strided_slice %12 {offsets = [0, 0], sizes = [1, 256], strides = [1, 1]} : vector<2x256xf32> to vector<1x256xf32>
    %153 = vector.broadcast %151 : vector<8x1xf32> to vector<8x256xf32>
    %154 = vector.broadcast %152 : vector<1x256xf32> to vector<8x256xf32>
    %155 = arith.mulf %153, %154 : vector<8x256xf32>
    %156 = vector.extract_strided_slice %3 {offsets = [0, 1], sizes = [8, 1], strides = [1, 1]} : vector<8x2xf32> to vector<8x1xf32>
    %157 = vector.extract_strided_slice %12 {offsets = [1, 0], sizes = [1, 256], strides = [1, 1]} : vector<2x256xf32> to vector<1x256xf32>
    %158 = vector.broadcast %156 : vector<8x1xf32> to vector<8x256xf32>
    %159 = vector.broadcast %157 : vector<1x256xf32> to vector<8x256xf32>
    %160 = arith.mulf %158, %159 : vector<8x256xf32>
    %161 = arith.addf %155, %160 : vector<8x256xf32>
    %162 = vector.broadcast %7 : vector<8x1xf32> to vector<8x256xf32>
    %163 = arith.addf %161, %162 : vector<8x256xf32>
    %cst_15 = arith.constant 0.000000e+00 : f32
    %164 = vector.broadcast %cst_15 : f32 to vector<8x256xf32>
    %165 = arith.maximumf %163, %164 : vector<8x256xf32>
    %166 = math.absf %163 : vector<8x256xf32>
    %cst_16 = arith.constant 0.000000e+00 : f32
    %167 = vector.broadcast %cst_16 : f32 to vector<8x256xf32>
    %168 = arith.subf %167, %166 : vector<8x256xf32>
    %169 = math.exp %168 : vector<8x256xf32>
    %170 = math.log1p %169 : vector<8x256xf32>
    %171 = arith.addf %165, %170 : vector<8x256xf32>
    %172 = vector.broadcast %10 : vector<8x1xf32> to vector<8x256xf32>
    %173 = arith.mulf %172, %150 : vector<8x256xf32>
    %cst_17 = arith.constant dense<0.000000e+00> : vector<256xf32>
    %174 = vector.multi_reduction <add>, %173, %cst_17 [0] : vector<8x256xf32> to vector<256xf32>
    %175 = vector.shape_cast %174 : vector<256xf32> to vector<1x256xf32>
    %176 = vector.broadcast %11 : vector<8x1xf32> to vector<8x256xf32>
    %177 = arith.mulf %176, %171 : vector<8x256xf32>
    %cst_18 = arith.constant dense<0.000000e+00> : vector<256xf32>
    %178 = vector.multi_reduction <add>, %177, %cst_18 [0] : vector<8x256xf32> to vector<256xf32>
    %179 = vector.shape_cast %178 : vector<256xf32> to vector<1x256xf32>
    %180 = arith.addf %175, %179 : vector<1x256xf32>
    %181 = vector.extract_strided_slice %4 {offsets = [0, 0], sizes = [1, 1], strides = [1, 1]} : vector<1x2xf32> to vector<1x1xf32>
    %182 = vector.extract_strided_slice %12 {offsets = [0, 0], sizes = [1, 256], strides = [1, 1]} : vector<2x256xf32> to vector<1x256xf32>
    %183 = vector.broadcast %181 : vector<1x1xf32> to vector<1x256xf32>
    %184 = arith.mulf %183, %182 : vector<1x256xf32>
    %185 = vector.extract_strided_slice %4 {offsets = [0, 1], sizes = [1, 1], strides = [1, 1]} : vector<1x2xf32> to vector<1x1xf32>
    %186 = vector.extract_strided_slice %12 {offsets = [1, 0], sizes = [1, 256], strides = [1, 1]} : vector<2x256xf32> to vector<1x256xf32>
    %187 = vector.broadcast %185 : vector<1x1xf32> to vector<1x256xf32>
    %188 = arith.mulf %187, %186 : vector<1x256xf32>
    %189 = arith.addf %184, %188 : vector<1x256xf32>
    %190 = arith.addf %180, %189 : vector<1x256xf32>
    %191 = vector.broadcast %9 : vector<1x1xf32> to vector<1x256xf32>
    %192 = arith.addf %190, %191 : vector<1x256xf32>
    %c0_19 = arith.constant 0 : index
    %c0_20 = arith.constant 0 : index
    %193 = vector.load %arg3[%c0_19, %c0_20] : memref<1x256xf32, #tpu.memory_space<vmem>>, vector<1x256xf32>
    tpu.vector_store %arg3[%c0_19, %c0_20], %192 {strides = array<i32>} : memref<1x256xf32, #tpu.memory_space<vmem>>, vector<1x256xf32>,
    return
  }
  func.func @transform_0(%arg0: i32) -> (i32, i32) {
    %c0_i32 = arith.constant 0 : i32
    %c0_i32_0 = arith.constant 0 : i32
    return %c0_i32, %arg0 : i32, i32
  }
  func.func @transform_1(%arg0: i32) -> (i32, i32) {
    %c0_i32 = arith.constant 0 : i32
    %c0_i32_0 = arith.constant 0 : i32
    %c0_i32_1 = arith.constant 0 : i32
    return %c0_i32, %c0_i32_0 : i32, i32
  }
  func.func @transform_2(%arg0: i32) -> (i32, i32) {
    %c0_i32 = arith.constant 0 : i32
    %c0_i32_0 = arith.constant 0 : i32
    return %c0_i32, %arg0 : i32, i32
  }
}

</mosaic_0001>

<bundles_post_ra>
// kernel: _lambda_.1
= control target key start
LH: loop header
LB: loop body
LE: loop exit
PB: predicated region body
PF: predicated region fallthrough
CT: control target
= control target key end

     0   :  { %7 = vsyncpa [#allocation3], 0  ;;  %s1353_s0 = inlined_call_operand.hbm [shape: f32[2,512], index: 0, kind: input, shape index: {}]   ;;  %s1354_s1 = inlined_call_operand.hbm [shape: f32[104,16], index: 1, kind: input, shape index: {}]   ;;  %s1355_s2 = inlined_call_operand.hbm [shape: f32[1,512], index: 2, kind: output, shape index: {}]  }
   0x1   :  { %9 = vsyncpa [#allocation3 + $0x1], 0 }
   0x2   :  { %10 = vsyncpa [#allocation6], 0 }
   0x3   :  { %11 = vsyncpa [#allocation4], 0 }
   0x4   :  { %13 = vsyncpa [#allocation4 + $0x1], 0  ;;  %s1061_s9 = smov 0   ;;  %s1063_s10 = smov 0  }
   0x5   :  { %s1065_s11 = smov 0   ;;  %s1067_s12 = smov 0  }
   0x6 LB: > { %s108_s15 = sshll.u32 %s1354_s1, 4  ;;  %s1085_s16 = sadd.s32 4294967295, %s1025_s12   ;;  %s1025_s12 = sphi %s1067_s12, %s1369_s12   ;;  %s1021_s11 = sphi %s1065_s11, %s1368_s11   ;;  %s1017_s10 = sphi %s1063_s10, %s1367_s10   ;;  %s1013_s9 = sphi %s1061_s9, %s1366_s9   ;;  %s109_s15 = int_to_ptr.hbm [resolvable:$true] %s108_s15 }
   0x7   : > { %p749_p0 = scmp.ge.s32.totalorder %s1025_s12, 1  ;;  %p40_p1 = scmp.eq.s32.totalorder %s1085_s16, 0 }
   0x8   : > { %p97_p2 = scmp.lt.s32.totalorder %s1025_s12, 3  ;;  %s1027_s18 = smov [#allocation5]  }
   0x9   : > { %s110_s19 = sshll.u32 %s1027_s18, 4  ;;  %s1028_s20 = smov 128   ;;  %s111_s19 = int_to_ptr.vmem [resolvable:$true] %s110_s19 }
   0xa   : > { %p1090_p3 = pnand %p749_p0, %p97_p2  ;;  %s1029_s21 = smov 8  }
   0xb   : > { %s748_s22 = sadd.s32 4294967294, %s1025_s12   ;;  %s1101_s23 = sadd.s32 1, %s1025_s12  }
   0xc   : > { %p772_p4 = pneg %p1090_p3  ;;  %s26_s24 = sadd.s32 1, %s1021_s11 }
   0xd   : > { %s23_s25 = ssub.s32 %s1025_s12, %s1101_s23  ;;  %p33_p7 = scmp.ne.s32.totalorder %s1021_s11, %s1017_s10 }
   0xe   : > { %p773_p6 = pnand %p772_p4, %p40_p1  ;;  %p24_p8 = scmp.eq.s32.totalorder %s23_s25, 0 }
   0xf   : > { %p34_p9 = scmp.eq.s32.totalorder %s1025_s12, 0  ;;  %p39_p10 = scmp.ne.s32.totalorder %s1017_s10, %s1013_s9 }
  0x10   : > { %775 = dma.hbm_to_vmem [thread:$0]  (!%p773_p6), %s109_s15, 1664, %s111_s19, [#allocation6], %s1028_s20, %s1028_s20, %s1029_s21  }
  0x11   : > { %p84_p11 = scmp.eq.s32.totalorder %s1085_s16, 1  ;;  %p1117_p12 = por %p40_p1, %p39_p10 }
  0x12   : > { %s1113_s26 = scalar_select %p24_p8, %s1021_s11, %s26_s24  }
  0x13   : > { %p1121_p13 = por %p84_p11, %p33_p7  ;;  %p90_p0 = scmp.eq.s32.totalorder %s748_s22, 1 }
  0x14   : > { %p35_p2 = por %p34_p9, %p33_p7  ;;  %s124_s29 = sand.u32 1, %s1021_s11  }
  0x15   : > { %p1126_p4 = por %p90_p0, %p39_p10  ;;  %p785_p6 = scmp.lt.s32.totalorder %s1025_s12, 2 }
  0x16   : > { %s752_s3 = sshll.u32 %s124_s29, 2  ;;  %s763_s4 = sshll.u32 %s1025_s12, 2 }
  0x17   : > { %s133_s7 = scalar_lea.hbm %s1353_s0, %s763_s4  ;;  %s128_s13 = scalar_lea.vmem [#allocation2], %s752_s3 }
  0x18   : > { %s135_s8 = sshll.u32 %s133_s7, 4  ;;  %s137_s14 = sshll.u32 %s128_s13, 4  ;;  %s136_s8 = int_to_ptr.hbm [resolvable:$true] %s135_s8  ;;  %s138_s14 = int_to_ptr.vmem [resolvable:$true] %s137_s14 }
  0x19   : > { %p1135_p8 = pnand %p785_p6, %p35_p2  ;;  %s125_s18 = scalar_lea.sflag [#allocation3], %s124_s29 }
  0x1a   : > { %s925_s19 = sshra.s32 %s136_s8, 4  ;;  %s932_s24 = scalar_lea.hbm %s1353_s0, 8  ;;  %s926_s19 = int_to_ptr.hbm [resolvable:$true] %s925_s19 }
  0x1b   : > { %s927_s20 = scalar_lea.hbm %s926_s19, 4  ;;  %p929_p9 = pneg %p1135_p8 }
  0x1c   : > { %p928_p7 = scmp.ne.s32.totalorder %s926_s19, %s927_s20  ;;  %p933_p0 = scmp.lt.s32.totalorder %s926_s19, %s1353_s0 }
  0x1d   : > { %p934_p2 = scmp.lt.s32.totalorder %s932_s24, %s927_s20 }
  0x1e   : > { %p930_p10 = pnand %p929_p9, %p928_p7 }
  0x1f   : > { %p935_p6 = por %p934_p2, %p933_p0 }
  0x20   : > { %p931_p11 = pneg %p930_p10 }
  0x22   : > { %p936_p5 = pnand %p935_p6, %p931_p11 }
  0x24   : > { %939 = shalt.err (!%p936_p5)
}
  0x25   : > { %779 = dma.hbm_to_vmem [thread:$0]  (!%p1135_p8), %s136_s8, 64, %s138_s14, %s125_s18  }
  0x26   : > { %146 = sbr.rel (%p1090_p3) target bundleno = 307 (0x133), region = 28  ;;  %s1152_s29 = sand.u32 (!%p1090_p3), 1, %s1017_s10  }
  0x27   : > { %s756_s4 = sshll.u32 (!%p1090_p3), %s1152_s29, 2  ;;  %s149_s5 = scalar_lea.sflag (!%p1090_p3), [#allocation3], %s1152_s29 }
  0x28   : > { %s1156_s6 = scalar_lea.vmem (!%p1090_p3), [#allocation2], %s756_s4 }
  0x2b   : > { %1000 = dma.done.wait (%p1117_p12), %s149_s5, 64  }
  0x2c   : > { %1002 = vsyncadd (%p1117_p12), %s149_s5, 4294967232 }
  0x2d   : > { %1004 = dma.done.wait (%p40_p1), [#allocation6], 1664  }
  0x2e   : > { %1006 = vsyncadd (%p40_p1), [#allocation6], 4294965632  ;;  %v1030_v0 = vmov 1   ;;  %v1031_v1 = vmov 0   ;;  %v181_v2 = vld [vmem:[#allocation5] sm:$0xff]  ;;  %v187_v3 = vld [vmem:[#allocation5 + $0x30] sm:$0xff] }
  0x2f   : > { %840 = vset.pattern.permute.xlu1 %v1030_v0  ;;  %839 = vset.pattern.permute.xlu0 %v1031_v1  ;;  %v182_v4 = vld [vmem:[#allocation5 + $0x8] sm:$0xff]  ;;  %v188_v5 = vld [vmem:[#allocation5 + $0x38] sm:$0xff]  ;;  %v183_v6 = vld [vmem:[#allocation5 + $0x10] sm:$0xff]  ;;  %v1032_v7 = vmov 2   ;;  %v1033_v8 = vmov 4   ;;  %v1034_v9 = vmov 3  }
  0x30   : > { %841 = vset.pattern.permute.xlu2 %v1031_v1  ;;  %217 = vperm.xlu1 %840, %v181_v2   ;;  %v1035_v10 = vmov 5   ;;  %v1036_v11 = vmov 6   ;;  %v1037_v12 = vmov 8   ;;  %v1038_v13 = vmov 7   ;;  %v185_v17 = vld [vmem:[#allocation5 + $0x20] sm:$0xff]  ;;  %v192_v20 = vld [vmem:[#allocation5 + $0x58] sm:$0xff] }
  0x31   : > { %197 = vperm.xlu0 %839, %v181_v2   ;;  %240 = vperm.xlu2 %841, %v187_v3   ;;  %v1039_v14 = vmov 9   ;;  %v1040_v15 = vmov 13   ;;  %v1041_v16 = vmov 10   ;;  %v1042_v18 = vmov 11   ;;  %v193_v23 = vld [vmem:[#allocation5 + $0x60] sm:$0x1] }
  0x32   : > { %v1043_v19 = vmov 12   ;;  %v1044_v21 = vmov 14   ;;  %v1045_v22 = vmov 15   ;;  %v184_v24 = vld [vmem:[#allocation5 + $0x18] sm:$0xff]  ;;  %v189_v25 = vld [vmem:[#allocation5 + $0x40] sm:$0xff]  ;;  %v190_v26 = vld [vmem:[#allocation5 + $0x48] sm:$0xff] }
  0x33   : > { %v191_v27 = vld [vmem:[#allocation5 + $0x50] sm:$0xff]  ;;  %v186_v28 = vld [vmem:[#allocation5 + $0x28] sm:$0x1]  ;;  %v1177_v30 = vld [vmem:[%s1156_s6] sm:$0xf]  ;;  %s758_s17 = sshll.u32 %s1152_s29, 1 }
  0x34   : > { %v224_v31 = vperm.slane %v1177_v30, 1  ;;  %v225_v32 = vperm.slane %v1177_v30, 3  ;;  %v206_v33 = vperm.slane %v1177_v30, 0  ;;  %v207_v34 = vperm.slane %v1177_v30, 2  ;;  %s760_s27 = sshll.u32 %s1085_s16, 1  ;;  %s178_s14 = scalar_lea.vmem [#allocation7], %s758_s17 }
  0x35   : > { %s663_s13 = scalar_lea.hbm %s1355_s2, %s760_s27  ;;  %s665_s15 = sshll.u32 %s178_s14, 4  ;;  %vm644_vm8 = vcmask 1040384   ;;  %s666_s15 = int_to_ptr.vmem [resolvable:$true] %s665_s15 }
  0x36   : > { %v1185_v36 = vperm.slane %v224_v31, 1  ;;  %v1189_v37 = vperm.slane %v225_v32, 1  ;;  %v1193_v38 = vperm.slane %v206_v33, 0  ;;  %v1197_v39 = vperm.slane %v207_v34, 0  ;;  %s667_s18 = sshll.u32 %s663_s13, 4  ;;  %s653_s16 = scalar_lea.sflag [#allocation4], %s1152_s29  ;;  %s668_s18 = int_to_ptr.hbm [resolvable:$true] %s667_s18 }
  0x37   : > { %s969_s19 = sshra.s32 %s668_s18, 4  ;;  %s975_s24 = scalar_lea.hbm %s1355_s2, 4  ;;  %s970_s19 = int_to_ptr.hbm [resolvable:$true] %s969_s19 }
  0x38   : > { %221 = vperm.xlu1 %840, %v182_v4   ;;  %s971_s20 = scalar_lea.hbm %s970_s19, 2  ;;  %p976_p12 = scmp.lt.s32.totalorder %s970_s19, %s1355_s2 }
  0x39   : > { %202 = vperm.xlu0 %839, %v182_v4   ;;  %245 = vperm.xlu2 %841, %v188_v5   ;;  %p972_p1 = scmp.ne.s32.totalorder %s970_s19, %s971_s20  ;;  %p977_p8 = scmp.lt.s32.totalorder %s975_s24, %s971_s20 }
  0x3b   : > { %p973_p3 = pnand %p972_p1, %p1121_p13  ;;  %p978_p7 = por %p977_p8, %p976_p12 }
  0x3d   : > { %p974_p5 = pneg %p973_p3 }
  0x3f   : > { %p979_p9 = pnand %p978_p7, %p974_p5 }
  0x40   : > { %322 = vperm.xlu1 %840, %v183_v6  }
  0x41   : > { %314 = vperm.xlu0 %839, %v183_v6   ;;  %842 = vset.pattern.permute.xlu2 %v1032_v7 }
  0x42   : > { %332 = vperm.xlu2 %842, %v183_v6  }
  0x48   : > { %844 = vset.pattern.permute.xlu1 %v1033_v8 }
  0x49   : > { %843 = vset.pattern.permute.xlu0 %v1034_v9  ;;  %352 = vperm.xlu1 %844, %v183_v6  }
  0x4a   : > { %342 = vperm.xlu0 %843, %v183_v6   ;;  %845 = vset.pattern.permute.xlu2 %v1035_v10 }
  0x4b   : > { %362 = vperm.xlu2 %845, %v183_v6  }
  0x51   : > { %846 = vset.pattern.permute.xlu1 %v1036_v11 }
  0x52   : > { %848 = vset.pattern.permute.xlu0 %v1037_v12  ;;  %372 = vperm.xlu1 %846, %v183_v6  }
  0x53   : > { %392 = vperm.xlu0 %848, %v183_v6   ;;  %847 = vset.pattern.permute.xlu2 %v1038_v13 }
  0x54   : > { %382 = vperm.xlu2 %847, %v183_v6  }
  0x5a   : > { %849 = vset.pattern.permute.xlu1 %v1039_v14 }
  0x5b   : > { %853 = vset.pattern.permute.xlu0 %v1040_v15  ;;  %402 = vperm.xlu1 %849, %v183_v6  }
  0x5c   : > { %442 = vperm.xlu0 %853, %v183_v6   ;;  %850 = vset.pattern.permute.xlu2 %v1041_v16 }
  0x5d   : > { %412 = vperm.xlu2 %850, %v183_v6  }
  0x63   : > { %851 = vset.pattern.permute.xlu1 %v1042_v18 }
  0x64   : > { %858 = vset.pattern.permute.xlu0 %v1031_v1  ;;  %422 = vperm.xlu1 %851, %v183_v6  }
  0x65   : > { %527 = vperm.xlu0 %858, %v185_v17   ;;  %852 = vset.pattern.permute.xlu2 %v1043_v19 }
  0x66   : > { %432 = vperm.xlu2 %852, %v183_v6  }
  0x6c   : > { %854 = vset.pattern.permute.xlu1 %v1044_v21 }
  0x6d   : > { %598 = vperm.xlu0 %858, %v192_v20   ;;  %452 = vperm.xlu1 %854, %v183_v6  }
  0x6e   : > { %855 = vset.pattern.permute.xlu2 %v1045_v22 }
  0x6f   : > { %462 = vperm.xlu2 %855, %v183_v6  }
  0x75   : > { %636 = vperm.xlu0 %858, %v193_v23   ;;  %856 = vset.pattern.permute.xlu1 %v1031_v1 }
  0x76   : > { %473 = vperm.xlu1 %856, %v184_v24  }
  0x77   : > { %857 = vset.pattern.permute.xlu2 %v1030_v0 }
  0x78   : > { %479 = vperm.xlu2 %857, %v184_v24  }
  0x7e   : > { %859 = vset.pattern.permute.xlu1 %v1030_v0 }
  0x7f   : > { %533 = vperm.xlu1 %859, %v185_v17  }
  0x80   : > { %860 = vset.pattern.permute.xlu2 %v1031_v1 }
  0x81   : > { %490 = vperm.xlu2 %860, %v189_v25  }
  0x87   : > { %861 = vset.pattern.permute.xlu1 %v1031_v1 }
  0x88   : > { %542 = vperm.xlu1 %861, %v190_v26  }
  0x89   : > { %579 = vperm.xlu2 %860, %v191_v27  }
  0x8b   : > { %v241_v29 = vpop.permute.xlu2 %240 }
  0x90   : > { %619 = vperm.xlu1 %861, %v186_v28  }
  0x91   : > { %862 = vset.pattern.permute.xlu2 %v1030_v0 }
  0x92   : > { %625 = vperm.xlu2 %862, %v186_v28  }
  0x93   : > { %v246_v35 = vpop.permute.xlu2 %245 }
  0x9c   : > { %v1205_v50 = vpop.permute.xlu2 %332 }
  0xa2   : > { %v218_v40 = vpop.permute.xlu1 %217 }
  0xa3   : > { %v198_v41 = vpop.permute.xlu0 %197  ;;  %v230_v42 = vmul.f32 %v1185_v36, %v218_v40  ;;  %v231_v43 = vmul.f32 %v1189_v37, %v218_v40 }
  0xa4   : > { %v212_v44 = vmul.f32 %v1193_v38, %v198_v41  ;;  %v213_v45 = vmul.f32 %v1197_v39, %v198_v41 }
  0xa5   : > { %v1218_v5 = vpop.permute.xlu2 %362 }
  0xa6   : > { %v234_v46 = vadd.f32 %v230_v42, %v212_v44  ;;  %v235_v47 = vadd.f32 %v231_v43, %v213_v45 }
  0xa8   : > { %v248_v48 = vadd.f32 %v241_v29, %v234_v46  ;;  %v1203_v49 = vadd.f32 %v241_v29, %v235_v47 }
  0xaa   : > { %v256_v51 = vand.u32 2147483647, %v248_v48  ;;  %v257_v52 = vand.u32 2147483647, %v1203_v49  ;;  %v222_v53 = vpop.permute.xlu1 %221  ;;  %v252_v28 = vmax.f32 %v248_v48, 0.0  ;;  %v253_v41 = vmax.f32 %v1203_v49, 0.0 }
  0xab   : > { %v203_v54 = vpop.permute.xlu0 %202  ;;  %v232_v57 = vmul.f32 %v1185_v36, %v222_v53  ;;  %v233_v58 = vmul.f32 %v1189_v37, %v222_v53 }
  0xac   : > { %v260_v55 = vsub.f32 0.0, %v256_v51  ;;  %v261_v56 = vsub.f32 0.0, %v257_v52  ;;  %v214_v59 = vmul.f32 %v1193_v38, %v203_v54  ;;  %v215_v60 = vmul.f32 %v1197_v39, %v203_v54 }
  0xae   : > { %v264_v61 = vmul.f32 1.442695, %v260_v55  ;;  %v266_v62 = vmul.f32 1.442695, %v261_v56  ;;  %v236_v63 = vadd.f32 %v232_v57, %v214_v59  ;;  %v237_v0 = vadd.f32 %v233_v58, %v215_v60  ;;  %v1222_v21 = vpop.permute.xlu2 %382 }
  0xb0   : > { %863 = vpow2.f32 %v264_v61  ;;  %v1212_v1 = vadd.f32 %v246_v35, %v236_v63  ;;  %v1214_v2 = vadd.f32 %v246_v35, %v237_v0 }
  0xb1   : > { %865 = vpow2.f32 %v266_v62 }
  0xb2   : > { %v258_v3 = vand.u32 2147483647, %v1212_v1  ;;  %v259_v4 = vand.u32 2147483647, %v1214_v2  ;;  %v323_v6 = vpop.permute.xlu1 %322  ;;  %v254_v61 = vmax.f32 %v1212_v1, 0.0 }
  0xb3   : > { %v315_v44 = vpop.permute.xlu0 %314 }
  0xb4   : > { %v262_v7 = vsub.f32 0.0, %v258_v3  ;;  %v263_v8 = vsub.f32 0.0, %v259_v4 }
  0xb6   : > { %v864_v9 = vpop.eup %863  ;;  %v268_v12 = vmul.f32 1.442695, %v262_v7  ;;  %v270_v15 = vmul.f32 1.442695, %v263_v8 }
  0xb7   : > { %v866_v10 = vpop.eup %865  ;;  %v272_v11 = vadd.f32 1.0, %v864_v9  ;;  %v275_v13 = vmul.f32 -0.5, %v864_v9  ;;  %v278_v19 = vand.u32 2147483647, %v864_v9  ;;  %v1233_v57 = vpop.permute.xlu2 %412 }
  0xb8   : > { %v281_v14 = vadd.f32 1.0, %v866_v10  ;;  %v284_v16 = vmul.f32 -0.5, %v866_v10  ;;  %v287_v22 = vand.u32 2147483647, %v866_v10 }
  0xb9   : > { %867 = vlog2.f32 %v272_v11  ;;  %v276_v17 = vadd.f32 1.0, %v275_v13  ;;  %vm279_vm0 = vcmp.lt.f32.partialorder %v278_v19, 0.0004427343 }
  0xba   : > { %869 = vlog2.f32 %v281_v14  ;;  %v285_v20 = vadd.f32 1.0, %v284_v16  ;;  %vm288_vm1 = vcmp.lt.f32.partialorder %v287_v22, 0.0004427343 }
  0xbb   : > { %871 = vpow2.f32 %v268_v12  ;;  %v1220_v18 = vpop.permute.xlu1 %352  ;;  %v277_v26 = vmul.f32 %v864_v9, %v276_v17 }
  0xbc   : > { %873 = vpow2.f32 %v270_v15  ;;  %v286_v35 = vmul.f32 %v866_v10, %v285_v20  ;;  %v343_v17 = vpop.permute.xlu0 %342 }
  0xbf   : > { %v868_v23 = vpop.eup %867 }
  0xc0   : > { %v870_v24 = vpop.eup %869  ;;  %v274_v25 = vmul.f32 0.6931472, %v868_v23 }
  0xc1   : > { %v872_v27 = vpop.eup %871  ;;  %v283_v29 = vmul.f32 0.6931472, %v870_v24 }
  0xc2   : > { %v874_v40 = vpop.eup %873  ;;  %v280_v42 = vsel %vm279_vm0, %v277_v26, %v274_v25  ;;  %v290_v43 = vadd.f32 1.0, %v872_v27  ;;  %v293_v47 = vmul.f32 -0.5, %v872_v27  ;;  %v296_v54 = vand.u32 2147483647, %v872_v27 }
  0xc3   : > { %v289_v45 = vsel %vm288_vm1, %v286_v35, %v283_v29  ;;  %v1225_v46 = vadd.f32 %v280_v42, %v252_v28  ;;  %v299_v51 = vadd.f32 1.0, %v874_v40  ;;  %v302_v53 = vmul.f32 -0.5, %v874_v40 }
  0xc4   : > { %v1227_v52 = vadd.f32 %v289_v45, %v253_v41  ;;  %875 = vlog2.f32 %v290_v43  ;;  %v1229_v48 = vpop.permute.xlu1 %372  ;;  %v294_v49 = vadd.f32 1.0, %v293_v47  ;;  %v305_v59 = vand.u32 2147483647, %v874_v40 }
  0xc5   : > { %877 = vlog2.f32 %v299_v51  ;;  %v335_v55 = vperm.slane %v1225_v46, 2  ;;  %v325_v56 = vperm.slane %v1225_v46, 1  ;;  %v303_v58 = vadd.f32 1.0, %v302_v53  ;;  %v433_v53 = vpop.permute.xlu2 %432 }
  0xc6   : > { %v326_v60 = vperm.slane %v1227_v52, 1  ;;  %v317_v63 = vperm.slane %v1225_v46, 0  ;;  %v336_v3 = vperm.slane %v1227_v52, 2  ;;  %vm1239_vm2 = vcmp.lt.f32.partialorder %v296_v54, 0.0004427343 }
  0xc7   : > { %v327_v62 = vmul.f32 %v325_v56, %v323_v6  ;;  %v318_v8 = vperm.slane %v1227_v52, 0  ;;  %v337_v10 = vmul.f32 %v335_v55, %v1205_v50  ;;  %v295_v12 = vmul.f32 %v872_v27, %v294_v49 }
  0xc8   : > { %v328_v7 = vmul.f32 %v326_v60, %v323_v6  ;;  %v319_v13 = vmul.f32 %v317_v63, %v315_v44  ;;  %v304_v14 = vmul.f32 %v874_v40, %v303_v58  ;;  %vm1245_vm3 = vcmp.lt.f32.partialorder %v305_v59, 0.0004427343 }
  0xc9   : > { %v320_v16 = vmul.f32 %v318_v8, %v315_v44  ;;  %v355_v20 = vperm.slane %v1225_v46, 4  ;;  %v345_v6 = vperm.slane %v1225_v46, 3  ;;  %v346_v22 = vperm.slane %v1227_v52, 3  ;;  %v393_v8 = vpop.permute.xlu0 %392 }
  0xca   : > { %v876_v0 = vpop.eup %875  ;;  %v329_v19 = vadd.f32 %v327_v62, %v319_v13  ;;  %v338_v23 = vmul.f32 %v336_v3, %v1205_v50  ;;  %v356_v26 = vperm.slane %v1227_v52, 4  ;;  %v365_v29 = vperm.slane %v1225_v46, 5 }
  0xcb   : > { %v878_v9 = vpop.eup %877  ;;  %v292_v11 = vmul.f32 0.6931472, %v876_v0  ;;  %v330_v25 = vadd.f32 %v328_v7, %v320_v16  ;;  %v347_v40 = vmul.f32 %v345_v6, %v343_v17  ;;  %v255_v41 = vmax.f32 %v1214_v2, 0.0 }
  0xcc   : > { %v301_v1 = vmul.f32 0.6931472, %v878_v9  ;;  %v339_v35 = vadd.f32 %v337_v10, %v329_v19  ;;  %v366_v42 = vperm.slane %v1227_v52, 5  ;;  %v348_v50 = vmul.f32 %v346_v22, %v343_v17 }
  0xcd   : > { %v298_v24 = vsel %vm1239_vm2, %v295_v12, %v292_v11  ;;  %v403_v27 = vpop.permute.xlu1 %402  ;;  %v340_v43 = vadd.f32 %v338_v23, %v330_v25  ;;  %v357_v45 = vmul.f32 %v355_v20, %v1220_v18  ;;  %v375_v51 = vperm.slane %v1225_v46, 6  ;;  %v463_v19 = vpop.permute.xlu2 %462 }
  0xce   : > { %v307_v28 = vsel %vm1245_vm3, %v304_v14, %v301_v1  ;;  %v1261_v44 = vadd.f32 %v298_v24, %v254_v61  ;;  %v349_v47 = vadd.f32 %v347_v40, %v339_v35  ;;  %v358_v55 = vmul.f32 %v356_v26, %v1220_v18 }
  0xcf   : > { %v1265_v54 = vadd.f32 %v307_v28, %v255_v41  ;;  %v350_v49 = vadd.f32 %v348_v50, %v340_v43  ;;  %v376_v56 = vperm.slane %v1227_v52, 6  ;;  %v367_v2 = vmul.f32 %v365_v29, %v1218_v5 }
  0xd0   : > { %v385_v58 = vperm.slane %v1225_v46, 7  ;;  %v359_v59 = vadd.f32 %v357_v45, %v349_v47  ;;  %v368_v60 = vmul.f32 %v366_v42, %v1218_v5  ;;  %v386_v61 = vperm.slane %v1227_v52, 7 }
  0xd1   : > { %v360_v62 = vadd.f32 %v358_v55, %v350_v49  ;;  %v377_v0 = vmul.f32 %v375_v51, %v1229_v48  ;;  %v395_v3 = vperm.slane %v1261_v44, 0  ;;  %v378_v18 = vmul.f32 %v376_v56, %v1229_v48  ;;  %v443_v43 = vpop.permute.xlu0 %442 }
  0xd2   : > { %v369_v63 = vadd.f32 %v367_v2, %v359_v59  ;;  %v396_v7 = vperm.slane %v1265_v54, 0  ;;  %v387_v9 = vmul.f32 %v385_v58, %v1222_v21  ;;  %v405_v10 = vperm.slane %v1261_v44, 1 }
  0xd3   : > { %v370_v4 = vadd.f32 %v368_v60, %v360_v62  ;;  %v388_v52 = vmul.f32 %v386_v61, %v1222_v21  ;;  %v406_v12 = vperm.slane %v1265_v54, 1  ;;  %v415_v13 = vperm.slane %v1261_v44, 2 }
  0xd4   : > { %v379_v46 = vadd.f32 %v377_v0, %v369_v63  ;;  %v397_v14 = vmul.f32 %v395_v3, %v393_v8  ;;  %v416_v48 = vperm.slane %v1265_v54, 2  ;;  %v398_v16 = vmul.f32 %v396_v7, %v393_v8 }
  0xd5   : > { %v380_v11 = vadd.f32 %v378_v18, %v370_v4  ;;  %v407_v20 = vmul.f32 %v405_v10, %v403_v27  ;;  %v408_v22 = vmul.f32 %v406_v12, %v403_v27  ;;  %v417_v23 = vmul.f32 %v415_v13, %v1233_v57  ;;  %v480_v60 = vpop.permute.xlu2 %479 }
  0xd6   : > { %v423_v5 = vpop.permute.xlu1 %422  ;;  %v389_v1 = vadd.f32 %v387_v9, %v379_v46  ;;  %v435_v21 = vperm.slane %v1261_v44, 4  ;;  %v425_v25 = vperm.slane %v1261_v44, 3  ;;  %v418_v26 = vmul.f32 %v416_v48, %v1233_v57 }
  0xd7   : > { %v390_v15 = vadd.f32 %v388_v52, %v380_v11  ;;  %v436_v28 = vperm.slane %v1265_v54, 4  ;;  %v426_v35 = vperm.slane %v1265_v54, 3  ;;  %v445_v40 = vperm.slane %v1261_v44, 5 }
  0xd8   : > { %v399_v17 = vadd.f32 %v397_v14, %v389_v1  ;;  %v427_v42 = vmul.f32 %v425_v25, %v423_v5  ;;  %v446_v27 = vperm.slane %v1265_v54, 5  ;;  %v437_v51 = vmul.f32 %v435_v21, %v433_v53 }
  0xd9   : > { %v400_v6 = vadd.f32 %v398_v16, %v390_v15  ;;  %v428_v45 = vmul.f32 %v426_v35, %v423_v5  ;;  %v438_v49 = vmul.f32 %v436_v28, %v433_v53  ;;  %v455_v57 = vperm.slane %v1261_v44, 6 }
  0xda   : > { %v409_v24 = vadd.f32 %v407_v20, %v399_v17  ;;  %v456_v2 = vperm.slane %v1265_v54, 6  ;;  %v447_v58 = vmul.f32 %v445_v40, %v443_v43  ;;  %v448_v61 = vmul.f32 %v446_v27, %v443_v43 }
  0xdb   : > { %v410_v29 = vadd.f32 %v408_v22, %v400_v6  ;;  %v465_v4 = vperm.slane %v1261_v44, 7  ;;  %v466_v18 = vperm.slane %v1265_v54, 7  ;;  %v482_v9 = vmul.f32 %v480_v60, %v1185_v36 }
  0xdc   : > { %v419_v41 = vadd.f32 %v417_v23, %v409_v24  ;;  %v483_v46 = vmul.f32 %v480_v60, %v1189_v37  ;;  %v528_v23 = vpop.permute.xlu0 %527 }
  0xdd   : > { %v420_v50 = vadd.f32 %v418_v26, %v410_v29  ;;  %v467_v5 = vmul.f32 %v465_v4, %v463_v19  ;;  %v468_v52 = vmul.f32 %v466_v18, %v463_v19  ;;  %v491_v48 = vpop.permute.xlu2 %490  ;;  %v530_v19 = vmul.f32 %v528_v23, %v1193_v38 }
  0xde   : > { %v429_v55 = vadd.f32 %v427_v42, %v419_v41  ;;  %v531_v25 = vmul.f32 %v528_v23, %v1197_v39 }
  0xdf   : > { %v453_v47 = vpop.permute.xlu1 %452  ;;  %v430_v56 = vadd.f32 %v428_v45, %v420_v50 }
  0xe0   : > { %v439_v59 = vadd.f32 %v437_v51, %v429_v55  ;;  %v457_v63 = vmul.f32 %v455_v57, %v453_v47  ;;  %v458_v0 = vmul.f32 %v456_v2, %v453_v47 }
  0xe1   : > { %v440_v62 = vadd.f32 %v438_v49, %v430_v56 }
  0xe2   : > { %v449_v3 = vadd.f32 %v447_v58, %v439_v59 }
  0xe3   : > { %v450_v7 = vadd.f32 %v448_v61, %v440_v62 }
  0xe4   : > { %v459_v8 = vadd.f32 %v457_v63, %v449_v3 }
  0xe5   : > { %v460_v53 = vadd.f32 %v458_v0, %v450_v7 }
  0xe6   : > { %v469_v14 = vadd.f32 %v467_v5, %v459_v8 }
  0xe7   : > { %v470_v44 = vadd.f32 %v468_v52, %v460_v53  ;;  %v580_v52 = vpop.permute.xlu2 %579 }
  0xe8   : > { %v474_v10 = vpop.permute.xlu1 %473 }
  0xe9   : > { %v476_v11 = vmul.f32 %v474_v10, %v1193_v38  ;;  %v477_v12 = vmul.f32 %v474_v10, %v1197_v39 }
  0xeb   : > { %v484_v13 = vadd.f32 %v482_v9, %v476_v11  ;;  %v485_v1 = vadd.f32 %v483_v46, %v477_v12 }
  0xed   : > { %v486_v54 = vadd.f32 %v484_v13, %v469_v14  ;;  %v487_v15 = vadd.f32 %v485_v1, %v470_v44 }
  0xef   : > { %v493_v16 = vadd.f32 %v491_v48, %v486_v54  ;;  %v494_v17 = vadd.f32 %v491_v48, %v487_v15 }
  0xf1   : > { %v497_v20 = vand.u32 2147483647, %v493_v16  ;;  %v498_v6 = vand.u32 2147483647, %v494_v17  ;;  %v534_v22 = vpop.permute.xlu1 %533  ;;  %v495_v3 = vmax.f32 %v493_v16, 0.0  ;;  %v496_v8 = vmax.f32 %v494_v17, 0.0 }
  0xf2   : > { %v536_v29 = vmul.f32 %v534_v22, %v1185_v36  ;;  %v537_v35 = vmul.f32 %v534_v22, %v1189_v37 }
  0xf3   : > { %v499_v21 = vsub.f32 0.0, %v497_v20  ;;  %v500_v24 = vsub.f32 0.0, %v498_v6 }
  0xf4   : > { %v538_v40 = vadd.f32 %v536_v29, %v530_v19  ;;  %v539_v41 = vadd.f32 %v537_v35, %v531_v25 }
  0xf5   : > { %v501_v26 = vmul.f32 1.442695, %v499_v21  ;;  %v503_v28 = vmul.f32 1.442695, %v500_v24 }
  0xf7   : > { %879 = vpow2.f32 %v501_v26 }
  0xf8   : > { %881 = vpow2.f32 %v503_v28 }
  0xfa   : > { %v543_v42 = vpop.permute.xlu1 %542 }
  0xfb   : > { %v1303_v27 = vadd.f32 %v543_v42, %v538_v40  ;;  %v1305_v43 = vadd.f32 %v543_v42, %v539_v41  ;;  %v599_v42 = vpop.permute.xlu0 %598 }
  0xfd   : > { %v880_v50 = vpop.eup %879  ;;  %v549_v38 = vand.u32 2147483647, %v1303_v27  ;;  %v550_v39 = vand.u32 2147483647, %v1305_v43  ;;  %v547_v23 = vmax.f32 %v1303_v27, 0.0  ;;  %v548_v29 = vmax.f32 %v1305_v43, 0.0 }
  0xfe   : > { %v882_v45 = vpop.eup %881  ;;  %v505_v47 = vadd.f32 1.0, %v880_v50  ;;  %v508_v51 = vmul.f32 -0.5, %v880_v50  ;;  %v511_v58 = vand.u32 2147483647, %v880_v50 }
  0xff   : > { %v514_v36 = vadd.f32 1.0, %v882_v45  ;;  %v551_v55 = vsub.f32 0.0, %v549_v38  ;;  %v517_v37 = vmul.f32 -0.5, %v882_v45  ;;  %v552_v49 = vsub.f32 0.0, %v550_v39 }
 0x100   : > { %883 = vlog2.f32 %v505_v47  ;;  %v509_v2 = vadd.f32 1.0, %v508_v51  ;;  %v520_v60 = vand.u32 2147483647, %v882_v45  ;;  %vm512_vm4 = vcmp.lt.f32.partialorder %v511_v58, 0.0004427343 }
 0x101   : > { %885 = vlog2.f32 %v514_v36  ;;  %v553_v56 = vmul.f32 1.442695, %v551_v55  ;;  %v555_v57 = vmul.f32 1.442695, %v552_v49  ;;  %v518_v59 = vadd.f32 1.0, %v517_v37 }
 0x102   : > { %v510_v0 = vmul.f32 %v880_v50, %v509_v2  ;;  %vm521_vm5 = vcmp.lt.f32.partialorder %v520_v60, 0.0004427343  ;;  %v626_v2 = vpop.permute.xlu2 %625  ;;  %v620_v58 = vpop.permute.xlu1 %619 }
 0x103   : > { %887 = vpow2.f32 %v553_v56  ;;  %v519_v18 = vmul.f32 %v882_v45, %v518_v59  ;;  %v637_v30 = vpop.permute.xlu0 %636 }
 0x104   : > { %889 = vpow2.f32 %v555_v57 }
 0x106   : > { %v884_v61 = vpop.eup %883 }
 0x107   : > { %v886_v62 = vpop.eup %885  ;;  %v507_v63 = vmul.f32 0.6931472, %v884_v61 }
 0x108   : > { %v516_v4 = vmul.f32 0.6931472, %v886_v62  ;;  %v628_v62 = vmul.f32 %v626_v2, %v224_v31 }
 0x109   : > { %v888_v7 = vpop.eup %887  ;;  %v513_v53 = vsel %vm512_vm4, %v510_v0, %v507_v63  ;;  %v629_v0 = vmul.f32 %v626_v2, %v225_v32 }
 0x10a   : > { %v890_v9 = vpop.eup %889  ;;  %v522_v46 = vsel %vm521_vm5, %v519_v18, %v516_v4  ;;  %v523_v10 = vadd.f32 %v513_v53, %v495_v3  ;;  %v557_v5 = vadd.f32 1.0, %v888_v7  ;;  %v560_v12 = vmul.f32 -0.5, %v888_v7 }
 0x10b   : > { %v524_v11 = vadd.f32 %v522_v46, %v496_v8  ;;  %v566_v13 = vadd.f32 1.0, %v890_v9  ;;  %v569_v14 = vmul.f32 -0.5, %v890_v9  ;;  %v563_v15 = vand.u32 2147483647, %v888_v7 }
 0x10c   : > { %v582_v1 = vmul.f32 %v580_v52, %v523_v10  ;;  %891 = vlog2.f32 %v557_v5  ;;  %v561_v48 = vadd.f32 1.0, %v560_v12  ;;  %v572_v20 = vand.u32 2147483647, %v890_v9 }
 0x10d   : > { %v583_v44 = vmul.f32 %v580_v52, %v524_v11  ;;  %893 = vlog2.f32 %v566_v13  ;;  %v570_v16 = vadd.f32 1.0, %v569_v14  ;;  %vm564_vm6 = vcmp.lt.f32.partialorder %v563_v15, 0.0004427343 }
 0x10e   : > { %v584_v54 = vrot.slane %v582_v1, 4  ;;  %v562_v24 = vmul.f32 %v888_v7, %v561_v48  ;;  %vm573_vm7 = vcmp.lt.f32.partialorder %v572_v20, 0.0004427343  ;;  %v622_v4 = vmul.f32 %v620_v58, %v206_v33 }
 0x10f   : > { %v590_v17 = vrot.slane %v583_v44, 4  ;;  %v571_v26 = vmul.f32 %v890_v9, %v570_v16  ;;  %v623_v18 = vmul.f32 %v620_v58, %v207_v34  ;;  %v647_v52 = vlaneseq }
 0x110   : > { %v585_v19 = vadd.f32 %v584_v54, %v582_v1  ;;  %v630_v31 = vadd.f32 %v628_v62, %v622_v4 }
 0x111   : > { %v591_v28 = vadd.f32 %v590_v17, %v583_v44  ;;  %v631_v5 = vadd.f32 %v629_v0, %v623_v18  ;;  %vm649_vm9 = vcmp.lt.s32.totalorder %v647_v52, 256 }
 0x112   : > { %v892_v6 = vpop.eup %891  ;;  %v586_v38 = vrot.slane %v585_v19, 2 }
 0x113   : > { %v894_v22 = vpop.eup %893  ;;  %v559_v21 = vmul.f32 0.6931472, %v892_v6  ;;  %v592_v45 = vrot.slane %v591_v28, 2 }
 0x114   : > { %v568_v25 = vmul.f32 0.6931472, %v894_v22  ;;  %v587_v36 = vadd.f32 %v586_v38, %v585_v19 }
 0x115   : > { %v565_v35 = vsel %vm564_vm6, %v562_v24, %v559_v21  ;;  %v593_v37 = vadd.f32 %v592_v45, %v591_v28 }
 0x116   : > { %v574_v40 = vsel %vm573_vm7, %v571_v26, %v568_v25  ;;  %v575_v41 = vadd.f32 %v565_v35, %v547_v23  ;;  %v588_v43 = vrot.slane %v587_v36, 1 }
 0x117   : > { %v576_v50 = vadd.f32 %v574_v40, %v548_v29  ;;  %v594_v60 = vrot.slane %v593_v37, 1 }
 0x118   : > { %v601_v39 = vmul.f32 %v599_v42, %v575_v41  ;;  %v589_v7 = vadd.f32 %v588_v43, %v587_v36 }
 0x119   : > { %v602_v47 = vmul.f32 %v599_v42, %v576_v50  ;;  %v595_v53 = vadd.f32 %v594_v60, %v593_v37 }
 0x11a   : > { %v603_v27 = vrot.slane %v601_v39, 4 }
 0x11b   : > { %v609_v51 = vrot.slane %v602_v47, 4 }
 0x11c   : > { %v604_v55 = vadd.f32 %v603_v27, %v601_v39 }
 0x11d   : > { %v610_v49 = vadd.f32 %v609_v51, %v602_v47 }
 0x11e   : > { %v605_v56 = vrot.slane %v604_v55, 2 }
 0x11f   : > { %v611_v57 = vrot.slane %v610_v49, 2 }
 0x120   : > { %v606_v59 = vadd.f32 %v605_v56, %v604_v55 }
 0x121   : > { %v612_v61 = vadd.f32 %v611_v57, %v610_v49 }
 0x122   : > { %v607_v63 = vrot.slane %v606_v59, 1 }
 0x123   : > { %v613_v3 = vrot.slane %v612_v61, 1 }
 0x124   : > { %v608_v8 = vadd.f32 %v607_v63, %v606_v59 }
 0x125   : > { %v614_v9 = vadd.f32 %v613_v3, %v612_v61 }
 0x126   : > { %v615_v46 = vadd.f32 %v608_v8, %v589_v7 }
 0x127   : > { %v616_v10 = vadd.f32 %v614_v9, %v595_v53 }
 0x128   : > { %v632_v32 = vadd.f32 %v630_v31, %v615_v46 }
 0x129   : > { %v633_v33 = vadd.f32 %v631_v5, %v616_v10 }
 0x12a   : > { %v639_v11 = vadd.f32 %v637_v30, %v632_v32 }
 0x12b   : > { %v640_v34 = vadd.f32 %v637_v30, %v633_v33 }
 0x12d   : > { %v643_v12 = vrot.slane %v640_v34, 7 }
 0x12f   : > { %v645_v13 = vsel %vm644_vm8, %v639_v11, %v643_v12 }
 0x130   : > { %651 = vst.msk [vmem:[%s178_s14] sm:$0x3] %vm649_vm9, %v645_v13 }
 0x131   : > { %982 = shalt.err (!%p979_p9)
}
 0x132   : > { %770 = dma.vmem_to_hbm [thread:$0]  (%p1121_p13), %s666_s15, 32, %s668_s18, %s653_s16  }
 0x133 PF: > { %s679_s29 = sand.u32 1, %s1013_s9   ;;  %p1365_p10 = scmp.ge.s32.totalorder %s1025_s12, 2 }
 0x134   : > { %s680_s4 = scalar_lea.sflag [#allocation4], %s679_s29 }
 0x135   : > { %p781_p11 = pnand %p1365_p10, %p1126_p4 }
 0x137   : > { %p782_p0 = pneg %p781_p11 }
 0x139   : > { %1008 = dma.done.wait (%p782_p0), %s680_s4, 32  }
 0x13a   : > { %1010 = vsyncadd (%p782_p0), %s680_s4, 4294967264  ;;  %p16_p2 = scmp.ge.s32.totalorder %s1101_s23, 4   ;;  %s1366_s9 = smov %s1017_s10 }
 0x13b   : > { %s1367_s10 = smov %s1021_s11  ;;  %s1368_s11 = smov %s1113_s26 }
 0x13c   : > { %s1369_s12 = smov %s1101_s23  ;;  %18 = sbr.rel (!%p16_p2) target bundleno = 6 (0x6), region = 77 }
 0x141   :  { %686 = vsyncpa [#allocation3], 1 }
 0x142   :  { %688 = vsyncpa [#allocation3 + $0x1], 1 }
 0x143   :  { %689 = vsyncpa [#allocation6], 1 }
 0x144   :  { %690 = vsyncpa [#allocation4], 1 }
 0x145   :  { %692 = vsyncpa [#allocation4 + $0x1], 1 }

</bundles_post_ra>
